<compile_context>
chip_gen: v7x
topology: tpu7x:2x2x1
jax: 0.10.0
libtpu: 0.0.40
codegen_flags: <defaults>
</compile_context>

<pallas_src>
import functools

import jax
import jax.numpy as jnp
from jax import lax
from jax.experimental import pallas as pl
from jax.experimental.pallas import tpu as pltpu

_LANES = 128
_MAX_ROW_TILE = 4096  # 4096 x 128 x 4B = 2 MiB per f32 block (1 MiB for bf16)


def _lower_bound_partial_kernel(x_ref, o_ref, *, block_rows, fold_rows,
                                tiles_per_split, valid_rows, mask_needed):
    c = pl.program_id(0)   # split axis ("parallel")
    i = pl.program_id(1)   # reduction axis ("arbitrary")

    # o_ref keeps the same block index across i -> resident accumulator.
    @pl.when(i == 0)
    def _():
        o_ref[...] = jnp.zeros_like(o_ref)

    x = x_ref[...].astype(jnp.float32)      # cast per-tile, in-VMEM (cheap)
    relu = jnp.maximum(x, 0.0)

    if mask_needed:
        # Mask rows past the true row count (tail tile / clamped duplicate
        # tiles read unchecked data on TPU).
        base = (c * tiles_per_split + i) * block_rows
        row_idx = base + lax.broadcasted_iota(
            jnp.int32, (block_rows, _LANES), 0)
        relu = jnp.where(row_idx < valid_rows, relu, 0.0)

    if block_rows == fold_rows:
        folded = relu
    else:
        # Fold along vreg boundaries: pure VPU element-wise adds, no XLU.
        folded = jnp.sum(
            relu.reshape(block_rows // fold_rows, fold_rows, _LANES), axis=0)

    o_ref[...] += folded


def lower_bound_loss(output: jax.Array) -> jax.Array:
    """mean(clamp(output, min=0)) over all elements, computed in Pallas."""
    n_total = output.size
    flat = output.reshape(-1)  # free for contiguous arrays; keep native dtype

    pad = (-flat.shape[0]) % _LANES
    if pad:
        # Only for awkward sizes; zero padding is relu-neutral and the mean
        # divides by the ORIGINAL element count.
        flat = jnp.pad(flat, (0, pad))

    rows = flat.shape[0] // _LANES
    slab = flat.reshape(rows, _LANES)

    block_rows = min(_MAX_ROW_TILE, rows)          # full dim if rows < tile
    n_row_tiles = pl.cdiv(rows, block_rows)

    # Two independent partial accumulators so a 2-TC chip (v7x) can shard the
    # leading "parallel" axis; degenerates to a size-2 loop on 1-TC chips.
    num_splits = 2 if n_row_tiles >= 2 else 1
    tiles_per_split = pl.cdiv(n_row_tiles, num_splits)

    needs_clamp = num_splits * tiles_per_split > n_row_tiles
    mask_needed = num_splits * tiles_per_split * block_rows > rows

    fold_rows = 8 if block_rows % 8 == 0 else block_rows

    def x_index_map(c, i):
        t = c * tiles_per_split + i
        if needs_clamp:
            # Duplicate-read the last valid tile instead of going fully OOB;
            # the in-kernel row mask zeroes its contribution.
            t = jnp.minimum(t, n_row_tiles - 1)
        return (t, 0)

    kernel = functools.partial(
        _lower_bound_partial_kernel,
        block_rows=block_rows,
        fold_rows=fold_rows,
        tiles_per_split=tiles_per_split,
        valid_rows=rows,
        mask_needed=mask_needed,
    )

    elem_bytes = slab.dtype.itemsize
    cost = pl.CostEstimate(
        flops=2 * rows * _LANES,       # relu + accumulate per element
        transcendentals=0,
        bytes_accessed=rows * _LANES * elem_bytes
        + num_splits * fold_rows * _LANES * 4,
    )

    partials = pl.pallas_call(
        kernel,
        out_shape=jax.ShapeDtypeStruct((num_splits * fold_rows, _LANES),
                                       jnp.float32),
        grid_spec=pltpu.PrefetchScalarGridSpec(
            num_scalar_prefetch=0,
            grid=(num_splits, tiles_per_split),
            in_specs=[pl.BlockSpec((block_rows, _LANES), x_index_map)],
            out_specs=pl.BlockSpec((fold_rows, _LANES), lambda c, i: (c, 0)),
        ),
        compiler_params=pltpu.CompilerParams(
            dimension_semantics=("parallel", "arbitrary")),
        cost_estimate=cost,
    )(slab)

    # Single tiny reduction + mean in plain-JAX glue.
    return (jnp.sum(partials) / jnp.float32(n_total)).astype(jnp.float32)


if __name__ == "__main__":
    key = jax.random.PRNGKey(0)

    # Primary small NCHW-like input consistent with a loss fed by conv feats.
    x = jax.random.normal(key, (2, 4, 16, 16), dtype=jnp.float32)
    result = jax.block_until_ready(lower_bound_loss(x))
    ref = jnp.mean(jnp.maximum(x, 0.0))
    assert jnp.allclose(result, ref, rtol=1e-6, atol=1e-6), (result, ref)

    # Extra check: awkward size -> lane padding + non-multiple-of-8 row block.
    k1, k2 = jax.random.split(key)
    x_odd = jax.random.normal(k1, (2, 3, 7, 11), dtype=jnp.float32)
    r_odd = jax.block_until_ready(lower_bound_loss(x_odd))
    ref_odd = jnp.mean(jnp.maximum(x_odd, 0.0))
    assert jnp.allclose(r_odd, ref_odd, rtol=1e-6, atol=1e-6), (r_odd, ref_odd)

    # Extra check: multi-tile path with split axis + in-kernel tail masking.
    x_big = jax.random.normal(k2, (3, 5, 128, 150), dtype=jnp.float32)
    r_big = jax.block_until_ready(lower_bound_loss(x_big))
    ref_big = jnp.mean(jnp.maximum(x_big, 0.0))
    assert jnp.allclose(r_big, ref_big, rtol=1e-4, atol=1e-6), (r_big, ref_big)

    print("KERNEL_OK")
</pallas_src>

<mosaic_0001>
module attributes {stable_mosaic.version = 11 : i64} {
  func.func @_lower_bound_partial_kernel(%arg0: i32, %arg1: i32, %arg2: memref<16x128xf32, #tpu.memory_space<vmem>>, %arg3: memref<8x128xf32, #tpu.memory_space<vmem>>) attributes {dimension_semantics = [#tpu.dimension_semantics<parallel>, #tpu.dimension_semantics<arbitrary>], iteration_bounds = array<i64: 1, 1>, scalar_prefetch = 0 : i64, scratch_operands = 0 : i64, tpu.core_type = #tpu.core_type<tc>, window_params = [{transform_indices = @transform_0, window_bounds = array<i64: 16, 128>}, {transform_indices = @transform_1, window_bounds = array<i64: 8, 128>}]} {
    %c0_i32 = arith.constant 0 : i32
    %0 = arith.cmpi eq, %arg1, %c0_i32 : i32
    %1 = arith.extui %0 : i1 to i32
    %c0_i32_0 = arith.constant 0 : i32
    %2 = arith.cmpi ne, %1, %c0_i32_0 : i32
    scf.if %2 {
      %cst_7 = arith.constant 0.000000e+00 : f32
      %11 = vector.broadcast %cst_7 : f32 to vector<8x128xf32>
      %c0_8 = arith.constant 0 : index
      %c0_9 = arith.constant 0 : index
      %12 = vector.load %arg3[%c0_8, %c0_9] : memref<8x128xf32, #tpu.memory_space<vmem>>, vector<8x128xf32>
      tpu.vector_store %arg3[%c0_8, %c0_9], %11 {strides = array<i32>} : memref<8x128xf32, #tpu.memory_space<vmem>>, vector<8x128xf32>,
    } else {
    }
    %c0 = arith.constant 0 : index
    %c0_1 = arith.constant 0 : index
    %3 = vector.load %arg2[%c0, %c0_1] : memref<16x128xf32, #tpu.memory_space<vmem>>, vector<16x128xf32>
    %cst = arith.constant 0.000000e+00 : f32
    %4 = vector.broadcast %cst : f32 to vector<16x128xf32>
    %5 = arith.maximumf %3, %4 : vector<16x128xf32>
    %6 = vector.shape_cast %5 : vector<16x128xf32> to vector<2x8x128xf32>
    %cst_2 = arith.constant dense<0.000000e+00> : vector<8x128xf32>
    %7 = vector.multi_reduction <add>, %6, %cst_2 [0] : vector<2x8x128xf32> to vector<8x128xf32>
    %c0_3 = arith.constant 0 : index
    %c0_4 = arith.constant 0 : index
    %8 = vector.load %arg3[%c0_3, %c0_4] : memref<8x128xf32, #tpu.memory_space<vmem>>, vector<8x128xf32>
    %9 = arith.addf %8, %7 : vector<8x128xf32>
    %c0_5 = arith.constant 0 : index
    %c0_6 = arith.constant 0 : index
    %10 = vector.load %arg3[%c0_5, %c0_6] : memref<8x128xf32, #tpu.memory_space<vmem>>, vector<8x128xf32>
    tpu.vector_store %arg3[%c0_5, %c0_6], %9 {strides = array<i32>} : memref<8x128xf32, #tpu.memory_space<vmem>>, vector<8x128xf32>,
    return
  }
  func.func @transform_0(%arg0: i32, %arg1: i32) -> (i32, i32) {
    %c1_i32 = arith.constant 1 : i32
    %0 = arith.muli %arg0, %c1_i32 : i32
    %1 = arith.addi %0, %arg1 : i32
    %c0_i32 = arith.constant 0 : i32
    %c0_i32_0 = arith.constant 0 : i32
    return %1, %c0_i32 : i32, i32
  }
  func.func @transform_1(%arg0: i32, %arg1: i32) -> (i32, i32) {
    %c0_i32 = arith.constant 0 : i32
    %c0_i32_0 = arith.constant 0 : i32
    return %arg0, %c0_i32 : i32, i32
  }
}

</mosaic_0001>

<bundles_post_ra>
// kernel: tpu_custom_call.1
= control target key start
LH: loop header
LB: loop body
LE: loop exit
PB: predicated region body
PF: predicated region fallthrough
CT: control target
= control target key end

     0   :  { %6 = vsyncpa [#allocation3], 0  ;;  %s148_s0 = inlined_call_operand.hbm [shape: f32[16,128], index: 0, kind: input, shape index: {}]   ;;  %s149_s1 = inlined_call_operand.hbm [shape: f32[8,128], index: 1, kind: output, shape index: {}]  }
   0x1   :  { %7 = vsyncpa [#allocation4], 0  ;;  %s110_s6 = smov [#allocation2]   ;;  %s62_s10 = scalar_lea.hbm %s148_s0, 256 }
   0x2   :  { %s17_s7 = sshll.u32 %s110_s6, 4  ;;  %p63_p0 = scmp.ne.s32.totalorder %s148_s0, %s62_s10  ;;  %s18_s7 = int_to_ptr.vmem [resolvable:$true] %s17_s7 }
   0x3   :  { %p66_p1 = scmp.lt.u32.totalorder %s62_s10, %s148_s0 }
   0x5   :  { %p68_p2 = pnand %p66_p1, %p63_p0 }
   0x7   :  { %71 = shalt.err (!%p68_p2)
}
   0x8   :  { %s72_s15 = scalar_lea.vmem %s18_s7, 256  ;;  %p77_p4 = scmp.lt.s32.totalorder %s18_s7, %s18_s7 }
   0x9   :  { %p73_p3 = scmp.ne.s32.totalorder %s18_s7, %s72_s15  ;;  %p78_p5 = scmp.lt.s32.totalorder %s72_s15, %s72_s15 }
   0xb   :  { %p79_p6 = por %p78_p5, %p77_p4 }
   0xd   :  { %p80_p7 = pnand %p79_p6, %p73_p3 }
   0xf   :  { %83 = shalt.err (!%p80_p7)
}
  0x10   :  { %s111_s16 = smov 128   ;;  %s112_s17 = smov 8  }
  0x11   :  { %23 = dma.hbm_to_vmem [thread:$0]  %s148_s0, 256, %s18_s7, [#allocation3], %s111_s16, %s111_s16, %s112_s17  }
  0x12   :  { %106 = dma.done.wait [#allocation3], 256  }
  0x13   :  { %107 = vsyncadd [#allocation3], 4294967040  ;;  %v34_v0 = vld [vmem:[#allocation2] sm:$0xff]  ;;  %v35_v1 = vld [vmem:[#allocation2 + $0x8] sm:$0xff]  ;;  %s113_s20 = smov [#allocation5]  }
  0x14   :  { %v36_v2 = vmax.f32 %v34_v0, 0.0  ;;  %v37_v3 = vmax.f32 %v35_v1, 0.0  ;;  %s48_s21 = sshll.u32 %s113_s20, 4  ;;  %s49_s21 = int_to_ptr.vmem [resolvable:$true] %s48_s21 }
  0x15   :  { %s84_s22 = scalar_lea.vmem %s49_s21, 128  ;;  %p89_p9 = scmp.lt.s32.totalorder %s49_s21, %s49_s21 }
  0x16   :  { %v38_v4 = vadd.f32 %v37_v3, %v36_v2  ;;  %p85_p8 = scmp.ne.s32.totalorder %s49_s21, %s84_s22  ;;  %p90_p10 = scmp.lt.s32.totalorder %s84_s22, %s84_s22 }
  0x18   :  { %41 = vst [vmem:[#allocation5] sm:$0xff] %v38_v4  ;;  %p91_p11 = por %p90_p10, %p89_p9 }
  0x1a   :  { %p92_p12 = pnand %p91_p11, %p85_p8 }
  0x1c   :  { %95 = shalt.err (!%p92_p12)
}
  0x1d   :  { %s96_s24 = scalar_lea.hbm %s149_s1, 128 }
  0x1e   :  { %p97_p13 = scmp.ne.s32.totalorder %s149_s1, %s96_s24  ;;  %p100_p0 = scmp.lt.u32.totalorder %s96_s24, %s149_s1 }
  0x20   :  { %p102_p1 = pnand %p100_p0, %p97_p13 }
  0x22   :  { %105 = shalt.err (!%p102_p1)
}
  0x23   :  { %51 = dma.vmem_to_hbm [thread:$0]  %s49_s21, 128, %s149_s1, [#allocation4]  }
  0x24   :  { %108 = dma.done.wait [#allocation4], 128  }
  0x25   :  { %109 = vsyncadd [#allocation4], 4294967168 }
  0x26   :  { %55 = vsyncpa [#allocation3], 1 }
  0x27   :  { %56 = vsyncpa [#allocation4], 1 }

</bundles_post_ra>
